<compile_context>
chip_gen: v7x
topology: tpu7x:2x2x1
jax: 0.10.0
libtpu: 0.0.40
codegen_flags: <defaults>
</compile_context>

<pallas_src>
import functools

import jax
import jax.numpy as jnp
from jax import lax
from jax.experimental import pallas as pl
from jax.experimental.pallas import tpu as pltpu

_LANES = 128
_SUBLANES = 8
_MAX_BLOCK_ROWS = 1024   # (1024, 128) f32 block = 512 KiB per input
_NUM_PARTIALS = 2        # leading 'parallel' grid axis (one per TC on v7x)


def _huber_kernel(o_ref, t_ref, out_ref, acc_ref, *,
                  delta, half_over_delta, half_delta,
                  block_rows, full_rows, last_row_valid):
    c = pl.program_id(0)   # partial / core index (parallel)
    i = pl.program_id(1)   # sequential reduction step (arbitrary)

    @pl.when(i == 0)
    def _():
        acc_ref[...] = jnp.zeros_like(acc_ref)

    # Cast in-kernel; inputs stay in their native dtype in HBM.
    o = o_ref[...].astype(jnp.float32)
    t = t_ref[...].astype(jnp.float32)
    e = o - t
    ae = jnp.abs(e)
    loss = jnp.where(ae <= delta, e * e * half_over_delta + half_delta, ae)

    # Tail mask: zero out padded / out-of-range elements.  Uses the *logical*
    # (un-clamped) block index so re-read blocks from an odd core split and
    # edge-block garbage both contribute exactly zero.
    blk = c * pl.num_programs(1) + i
    row0 = blk * block_rows
    row_g = row0 + lax.broadcasted_iota(jnp.int32, (block_rows, _LANES), 0)
    lane = lax.broadcasted_iota(jnp.int32, (block_rows, _LANES), 1)
    valid = (row_g < (full_rows - 1)) | (
        (row_g == (full_rows - 1)) & (lane < last_row_valid))

    # Full-vreg elementwise accumulation (VPU only; no per-step XLU reduce).
    acc_ref[...] += jnp.where(valid, loss, 0.0)

    @pl.when(i == pl.num_programs(1) - 1)
    def _():
        total = jnp.sum(acc_ref[...])   # single cross-lane reduce per core
        r = lax.broadcasted_iota(jnp.int32, (_SUBLANES, _LANES), 0)
        l = lax.broadcasted_iota(jnp.int32, (_SUBLANES, _LANES), 1)
        out_ref[...] = jnp.where((r == 0) & (l == 0), total, 0.0)


@functools.partial(jax.jit, static_argnames=("delta",))
def huber_loss(output, target, delta=0.2):
    assert output.shape == target.shape
    n_valid = output.size

    o = output.reshape(-1)
    t = target.reshape(-1)

    # Pad only when the element count is not a multiple of 8*128 (at most 1023
    # extra elements); padded values are masked in-kernel so contents are moot.
    chunk = _SUBLANES * _LANES
    padded_len = pl.cdiv(n_valid, chunk) * chunk
    if padded_len != n_valid:
        o = jnp.pad(o, (0, padded_len - n_valid))
        t = jnp.pad(t, (0, padded_len - n_valid))

    rows = padded_len // _LANES
    o2 = o.reshape(rows, _LANES)
    t2 = t.reshape(rows, _LANES)

    block_rows = min(_MAX_BLOCK_ROWS, rows)   # rows is a multiple of 8
    n_blocks = pl.cdiv(rows, block_rows)
    bpc = pl.cdiv(n_blocks, _NUM_PARTIALS)    # blocks per partial/core

    full_rows = pl.cdiv(n_valid, _LANES)
    last_row_valid = n_valid - (full_rows - 1) * _LANES

    kernel = functools.partial(
        _huber_kernel,
        delta=float(delta),
        half_over_delta=0.5 / float(delta),
        half_delta=0.5 * float(delta),
        block_rows=block_rows,
        full_rows=full_rows,
        last_row_valid=last_row_valid,
    )

    def in_idx(c, i):
        # Clamp: with an odd block split the last step of core 1 re-reads the
        # final valid block (keeps DMA in bounds); its contribution is masked
        # to zero in-kernel.
        return (jnp.minimum(c * bpc + i, n_blocks - 1), 0)

    partials = pl.pallas_call(
        kernel,
        out_shape=jax.ShapeDtypeStruct(
            (_NUM_PARTIALS * _SUBLANES, _LANES), jnp.float32),
        grid_spec=pltpu.PrefetchScalarGridSpec(
            num_scalar_prefetch=0,
            grid=(_NUM_PARTIALS, bpc),
            in_specs=[
                pl.BlockSpec((block_rows, _LANES), in_idx),
                pl.BlockSpec((block_rows, _LANES), in_idx),
            ],
            out_specs=pl.BlockSpec((_SUBLANES, _LANES), lambda c, i: (c, 0)),
            scratch_shapes=[pltpu.VMEM((block_rows, _LANES), jnp.float32)],
        ),
        compiler_params=pltpu.CompilerParams(
            dimension_semantics=("parallel", "arbitrary"),
        ),
    )(o2, t2)

    # Each partial block carries its total at [0, 0]; everything else is zero.
    return jnp.sum(partials) / jnp.float32(n_valid)


if __name__ == "__main__":
    key = jax.random.PRNGKey(0)
    k1, k2, k3, k4 = jax.random.split(key, 4)

    def ref_loss(o, t, delta=0.2):
        e = o - t
        ae = jnp.abs(e)
        return jnp.mean(
            jnp.where(ae <= delta, 0.5 * e * e / delta + 0.5 * delta, ae))

    # Case 1: prediction/target pair (batch=2, channels=4, 16x16 spatial).
    shape = (2, 4, 16, 16)
    out1 = jax.random.normal(k1, shape, dtype=jnp.float32)
    tgt1 = jax.random.normal(k2, shape, dtype=jnp.float32)
    loss1 = huber_loss(out1, tgt1, delta=0.2)
    jax.block_until_ready(loss1)
    assert jnp.allclose(loss1, ref_loss(out1, tgt1), rtol=1e-5, atol=1e-6), (
        loss1, ref_loss(out1, tgt1))

    # Case 2: ragged element count exercising the in-kernel tail mask.
    shape2 = (3, 5, 7)
    out2 = jax.random.normal(k3, shape2, dtype=jnp.float32)
    tgt2 = jax.random.normal(k4, shape2, dtype=jnp.float32)
    loss2 = huber_loss(out2, tgt2, delta=0.2)
    jax.block_until_ready(loss2)
    assert jnp.allclose(loss2, ref_loss(out2, tgt2), rtol=1e-5, atol=1e-6), (
        loss2, ref_loss(out2, tgt2))

    print("KERNEL_OK")
</pallas_src>

<mosaic_0001>
module attributes {stable_mosaic.version = 11 : i64} {
  func.func @_huber_kernel(%arg0: i32, %arg1: i32, %arg2: memref<16x128xf32, #tpu.memory_space<vmem>>, %arg3: memref<16x128xf32, #tpu.memory_space<vmem>>, %arg4: memref<8x128xf32, #tpu.memory_space<vmem>>, %arg5: memref<16x128xf32, #tpu.memory_space<vmem>>) attributes {dimension_semantics = [#tpu.dimension_semantics<parallel>, #tpu.dimension_semantics<arbitrary>], iteration_bounds = array<i64: 2, 1>, scalar_prefetch = 0 : i64, scratch_operands = 1 : i64, tpu.core_type = #tpu.core_type<tc>, window_params = [{transform_indices = @transform_0, window_bounds = array<i64: 16, 128>}, {transform_indices = @transform_1, window_bounds = array<i64: 16, 128>}, {transform_indices = @transform_2, window_bounds = array<i64: 8, 128>}]} {
    %c0_i32 = arith.constant 0 : i32
    %0 = arith.cmpi eq, %arg1, %c0_i32 : i32
    %1 = arith.extui %0 : i1 to i32
    %c0_i32_0 = arith.constant 0 : i32
    %2 = arith.cmpi ne, %1, %c0_i32_0 : i32
    scf.if %2 {
      %cst_14 = arith.constant 0.000000e+00 : f32
      %38 = vector.broadcast %cst_14 : f32 to vector<16x128xf32>
      %c0_15 = arith.constant 0 : index
      %c0_16 = arith.constant 0 : index
      %39 = vector.load %arg5[%c0_15, %c0_16] : memref<16x128xf32, #tpu.memory_space<vmem>>, vector<16x128xf32>
      tpu.vector_store %arg5[%c0_15, %c0_16], %38 {strides = array<i32>} : memref<16x128xf32, #tpu.memory_space<vmem>>, vector<16x128xf32>,
    } else {
    }
    %c0 = arith.constant 0 : index
    %c0_1 = arith.constant 0 : index
    %3 = vector.load %arg2[%c0, %c0_1] : memref<16x128xf32, #tpu.memory_space<vmem>>, vector<16x128xf32>
    %c0_2 = arith.constant 0 : index
    %c0_3 = arith.constant 0 : index
    %4 = vector.load %arg3[%c0_2, %c0_3] : memref<16x128xf32, #tpu.memory_space<vmem>>, vector<16x128xf32>
    %5 = arith.subf %3, %4 : vector<16x128xf32>
    %6 = math.absf %5 : vector<16x128xf32>
    %cst = arith.constant 2.000000e-01 : f32
    %7 = vector.broadcast %cst : f32 to vector<16x128xf32>
    %8 = arith.cmpf ole, %6, %7 : vector<16x128xf32>
    %9 = arith.mulf %5, %5 : vector<16x128xf32>
    %cst_4 = arith.constant 2.500000e+00 : f32
    %10 = vector.broadcast %cst_4 : f32 to vector<16x128xf32>
    %11 = arith.mulf %9, %10 : vector<16x128xf32>
    %cst_5 = arith.constant 1.000000e-01 : f32
    %12 = vector.broadcast %cst_5 : f32 to vector<16x128xf32>
    %13 = arith.addf %11, %12 : vector<16x128xf32>
    %14 = arith.select %8, %13, %6 : vector<16x128xi1>, vector<16x128xf32>
    %c1_i32 = arith.constant 1 : i32
    %15 = arith.muli %arg0, %c1_i32 : i32
    %16 = arith.addi %15, %arg1 : i32
    %c16_i32 = arith.constant 16 : i32
    %17 = arith.muli %16, %c16_i32 : i32
    %18 = tpu.iota {dimensions = array<i32: 0>} : vector<16x128xi32>
    %19 = vector.broadcast %17 : i32 to vector<16x128xi32>
    %20 = arith.addi %19, %18 : vector<16x128xi32>
    %21 = tpu.iota {dimensions = array<i32: 1>} : vector<16x128xi32>
    %c15_i32 = arith.constant 15 : i32
    %22 = vector.broadcast %c15_i32 : i32 to vector<16x128xi32>
    %23 = arith.cmpi slt, %20, %22 : vector<16x128xi32>
    %c15_i32_6 = arith.constant 15 : i32
    %24 = vector.broadcast %c15_i32_6 : i32 to vector<16x128xi32>
    %25 = arith.cmpi eq, %20, %24 : vector<16x128xi32>
    %c128_i32 = arith.constant 128 : i32
    %26 = vector.broadcast %c128_i32 : i32 to vector<16x128xi32>
    %27 = arith.cmpi slt, %21, %26 : vector<16x128xi32>
    %28 = arith.andi %25, %27 : vector<16x128xi1>
    %29 = arith.ori %23, %28 : vector<16x128xi1>
    %c0_7 = arith.constant 0 : index
    %c0_8 = arith.constant 0 : index
    %30 = vector.load %arg5[%c0_7, %c0_8] : memref<16x128xf32, #tpu.memory_space<vmem>>, vector<16x128xf32>
    %cst_9 = arith.constant 0.000000e+00 : f32
    %31 = vector.broadcast %cst_9 : f32 to vector<16x128xf32>
    %32 = arith.select %29, %14, %31 : vector<16x128xi1>, vector<16x128xf32>
    %33 = arith.addf %30, %32 : vector<16x128xf32>
    %c0_10 = arith.constant 0 : index
    %c0_11 = arith.constant 0 : index
    %34 = vector.load %arg5[%c0_10, %c0_11] : memref<16x128xf32, #tpu.memory_space<vmem>>, vector<16x128xf32>
    tpu.vector_store %arg5[%c0_10, %c0_11], %33 {strides = array<i32>} : memref<16x128xf32, #tpu.memory_space<vmem>>, vector<16x128xf32>,
    %c0_i32_12 = arith.constant 0 : i32
    %35 = arith.cmpi eq, %arg1, %c0_i32_12 : i32
    %36 = arith.extui %35 : i1 to i32
    %c0_i32_13 = arith.constant 0 : i32
    %37 = arith.cmpi ne, %36, %c0_i32_13 : i32
    scf.if %37 {
      %c0_14 = arith.constant 0 : index
      %c0_15 = arith.constant 0 : index
      %38 = vector.load %arg5[%c0_14, %c0_15] : memref<16x128xf32, #tpu.memory_space<vmem>>, vector<16x128xf32>
      %39 = vector.shape_cast %38 : vector<16x128xf32> to vector<1x16x128xf32>
      %cst_16 = arith.constant dense<0.000000e+00> : vector<1xf32>
      %40 = vector.multi_reduction <add>, %39, %cst_16 [1, 2] : vector<1x16x128xf32> to vector<1xf32>
      %41 = vector.shape_cast %40 : vector<1xf32> to vector<1x1x1xf32>
      %42 = vector.extract %41[0, 0, 0] : f32 from vector<1x1x1xf32>
      %43 = tpu.iota {dimensions = array<i32: 0>} : vector<8x128xi32>
      %44 = tpu.iota {dimensions = array<i32: 1>} : vector<8x128xi32>
      %c0_i32_17 = arith.constant 0 : i32
      %45 = vector.broadcast %c0_i32_17 : i32 to vector<8x128xi32>
      %46 = arith.cmpi eq, %43, %45 : vector<8x128xi32>
      %c0_i32_18 = arith.constant 0 : i32
      %47 = vector.broadcast %c0_i32_18 : i32 to vector<8x128xi32>
      %48 = arith.cmpi eq, %44, %47 : vector<8x128xi32>
      %49 = arith.andi %46, %48 : vector<8x128xi1>
      %cst_19 = arith.constant 0.000000e+00 : f32
      %50 = vector.broadcast %42 : f32 to vector<8x128xf32>
      %51 = vector.broadcast %cst_19 : f32 to vector<8x128xf32>
      %52 = arith.select %49, %50, %51 : vector<8x128xi1>, vector<8x128xf32>
      %c0_20 = arith.constant 0 : index
      %c0_21 = arith.constant 0 : index
      %53 = vector.load %arg4[%c0_20, %c0_21] : memref<8x128xf32, #tpu.memory_space<vmem>>, vector<8x128xf32>
      tpu.vector_store %arg4[%c0_20, %c0_21], %52 {strides = array<i32>} : memref<8x128xf32, #tpu.memory_space<vmem>>, vector<8x128xf32>,
    } else {
    }
    return
  }
  func.func @transform_0(%arg0: i32, %arg1: i32) -> (i32, i32) {
    %c1_i32 = arith.constant 1 : i32
    %0 = arith.muli %arg0, %c1_i32 : i32
    %1 = arith.addi %0, %arg1 : i32
    %c0_i32 = arith.constant 0 : i32
    %2 = arith.minsi %1, %c0_i32 : i32
    %c0_i32_0 = arith.constant 0 : i32
    %c0_i32_1 = arith.constant 0 : i32
    return %2, %c0_i32_0 : i32, i32
  }
  func.func @transform_1(%arg0: i32, %arg1: i32) -> (i32, i32) {
    %c1_i32 = arith.constant 1 : i32
    %0 = arith.muli %arg0, %c1_i32 : i32
    %1 = arith.addi %0, %arg1 : i32
    %c0_i32 = arith.constant 0 : i32
    %2 = arith.minsi %1, %c0_i32 : i32
    %c0_i32_0 = arith.constant 0 : i32
    %c0_i32_1 = arith.constant 0 : i32
    return %2, %c0_i32_0 : i32, i32
  }
  func.func @transform_2(%arg0: i32, %arg1: i32) -> (i32, i32) {
    %c0_i32 = arith.constant 0 : i32
    %c0_i32_0 = arith.constant 0 : i32
    return %arg0, %c0_i32 : i32, i32
  }
}

</mosaic_0001>

<bundles_post_ra>
// kernel: huber_loss.1
= control target key start
LH: loop header
LB: loop body
LE: loop exit
PB: predicated region body
PF: predicated region fallthrough
CT: control target
= control target key end

     0   :  { %s443_s9 = smov 0   ;;  %s445_s10 = smov 0   ;;  %s486_s0 = inlined_call_operand.vmem [shape: f32[16,128], index: 0, kind: input, shape index: {}]   ;;  %s487_s1 = inlined_call_operand.vmem [shape: f32[16,128], index: 1, kind: input, shape index: {}]   ;;  %s488_s2 = inlined_call_operand.vmem [shape: f32[16,128], index: 2, kind: output, shape index: {}]  }
   0x1   :  { %s447_s11 = smov 0  }
   0x2 LB: > { %s24_s12 = sadd.s32 1, %s422_s10  ;;  %p369_p0 = scmp.ge.s32.totalorder %s426_s11, 1  ;;  %s426_s11 = sphi %s447_s11, %s12_s11   ;;  %s422_s10 = sphi %s445_s10, %s490_s10   ;;  %s418_s9 = sphi %s443_s9, %s489_s9  }
   0x3   : > { %p26_p1 = scmp.ge.s32.totalorder %s24_s12, 2  ;;  %p160_p2 = scmp.lt.s32.totalorder %s426_s11, 3 }
   0x5   : > { %s492_s12 = smov (%p26_p1, %s24_s12), 0  ;;  %p161_p3 = pnand %p369_p0, %p160_p2 }
   0x6   : > { %p193_p4 = scmp.lt.s32.totalorder (!%p161_p3), %s418_s9, 0  ;;  %v246_v0 = vlaneseq (!%p161_p3)  ;;  %s375_s15 = sshll.u32 (!%p161_p3), %s418_s9, 4 }
   0x7   : > { %164 = sbr.rel (%p161_p3) target bundleno = 243 (0xf3), region = 28  ;;  %v249_v3 = vstv (!%p161_p3), %s375_s15  ;;  %p216_p6 = scmp.lt.s32.totalorder (!%p161_p3), %s418_s9, 1 }
   0x8   : > { %v247_v1 = vshrl.u32 (!%p161_p3), %v246_v0, 7  ;;  %v253_v32 = vand.u32 (!%p161_p3), 127, %v246_v0 }
   0xa   : > { %v248_v2 = vadd.s32 (!%p161_p3), 8, %v247_v1  ;;  %v250_v7 = vadd.s32 (!%p161_p3), %v249_v3, %v247_v1  ;;  %vm286_vm8 = vcmp.eq.s32.totalorder (!%p161_p3), %v247_v1, 0  ;;  %vm287_vm9 = vcmp.eq.s32.totalorder (!%p161_p3), %v253_v32, 0 }
   0xb   : > { %vm288_vm10 = vmand (!%p161_p3), %vm286_vm8, %vm287_vm9 }
   0xc   : > { %v251_v10 = vadd.s32 (!%p161_p3), %v249_v3, %v248_v2  ;;  %vm254_vm0 = vcmp.lt.s32.totalorder (!%p161_p3), %v250_v7, 15  ;;  %vm256_vm1 = vcmp.eq.s32.totalorder (!%p161_p3), %v250_v7, 15 }
   0xd   : > { %vm261_vm6 = vmor (!%p161_p3), %vm254_vm0, %vm256_vm1 }
   0xe   : > { %s194_s13 = scalar_select %p193_p4, %s418_s9, 0  ;;  %vm255_vm2 = vcmp.lt.s32.totalorder %v251_v10, 15  ;;  %vm257_vm3 = vcmp.eq.s32.totalorder %v251_v10, 15 }
   0xf   : > { %vm262_vm7 = vmor %vm255_vm2, %vm257_vm3  ;;  %s496_s9 = smov (!%p216_p6, %s418_s9), 1 }
  0x10   : > { %s370_s14 = sshll.u32 %s194_s13, 1  ;;  %s374_s23 = sshll.u32 %s496_s9, 3 }
  0x11   : > { %p196_p5 = scmp.lt.s32.totalorder %s370_s14, 1  ;;  %s219_s26 = scalar_lea.vmem %s488_s2, %s374_s23 }
  0x13   : > { %s494_s14 = smov (!%p196_p5, %s370_s14), 1 }
  0x14   : > { %s371_s16 = sshll.u32 %s494_s14, 3 }
  0x15   : > { %s199_s19 = scalar_lea.vmem %s486_s0, %s371_s16  ;;  %s211_s22 = scalar_lea.vmem %s487_s1, %s371_s16 }
  0x16   : > { %v226_v4 = vld [vmem:[%s199_s19] sm:$0xff]  ;;  %v227_v5 = vld [vmem:[%s199_s19 + $0x8] sm:$0xff] }
  0x17   : > { %v228_v6 = vld [vmem:[%s211_s22] sm:$0xff]  ;;  %v229_v8 = vld [vmem:[%s211_s22 + $0x8] sm:$0xff] }
  0x18   : > { %v230_v9 = vsub.f32 %v226_v4, %v228_v6  ;;  %v231_v11 = vsub.f32 %v227_v5, %v229_v8 }
  0x1a   : > { %v232_v12 = vand.u32 2147483647, %v230_v9  ;;  %v236_v13 = vmul.f32 %v230_v9, %v230_v9  ;;  %v233_v14 = vand.u32 2147483647, %v231_v11  ;;  %v237_v15 = vmul.f32 %v231_v11, %v231_v11 }
  0x1c   : > { %v238_v16 = vmul.f32 2.5, %v236_v13  ;;  %vm234_vm4 = vcmp.le.f32.partialorder %v232_v12, 0.2  ;;  %v239_v17 = vmul.f32 2.5, %v237_v15  ;;  %vm235_vm5 = vcmp.le.f32.partialorder %v233_v14, 0.2 }
  0x1e   : > { %v240_v18 = vadd.f32 0.1, %v238_v16  ;;  %v241_v19 = vadd.f32 0.1, %v239_v17 }
  0x20   : > { %v242_v20 = vsel %vm234_vm4, %v240_v18, %v232_v12  ;;  %v243_v21 = vsel %vm235_vm5, %v241_v19, %v233_v14 }
  0x21   : > { %v265_v22 = vsel %vm261_vm6, %v242_v20, 0.0  ;;  %v266_v23 = vsel %vm262_vm7, %v243_v21, 0.0 }
  0x22   : > { %v276_v24 = vadd.f32 %v266_v23, %v265_v22 }
  0x24   : > { %277 = vadd.xlane.f32.xlu0 %v276_v24 }
  0xb1   : > { %v278_v25 = vpop.xlane.xlu0 %277 }
  0xb2   : > { %v279_v26 = vrot.slane %v278_v25, 4 }
  0xb4   : > { %v280_v27 = vadd.f32 %v279_v26, %v278_v25 }
  0xb6   : > { %v281_v28 = vrot.slane %v280_v27, 2 }
  0xb8   : > { %v282_v29 = vadd.f32 %v281_v28, %v280_v27 }
  0xba   : > { %v283_v30 = vrot.slane %v282_v29, 1 }
  0xbc   : > { %v284_v31 = vadd.f32 %v283_v30, %v282_v29 }
  0xbe   : > { %378 = vpush %v284_v31 }
  0xef   : > { %s379_s27 = spop %378 }
  0xf0   : > { %v289_v33 = vstv %s379_s27 }
  0xf1   : > { %v290_v34 = vsel %vm288_vm10, %v289_v33, 0.0 }
  0xf2   : > { %291 = vst [vmem:[%s219_s26] sm:$0xff] %v290_v34 }
  0xf3 PF: > { %s12_s11 = sadd.s32 1, %s426_s11   ;;  %s489_s9 = smov %s422_s10 }
  0xf4   : > { %p9_p7 = scmp.ge.s32.totalorder %s12_s11, 4   ;;  %s490_s10 = smov %s492_s12 }
  0xf6   :  { %11 = sbr.rel (!%p9_p7) target bundleno = 2 (0x2), region = 69 }

</bundles_post_ra>
